<compile_context>
chip_gen: v6e
topology: v6e:2x2x1
jax: 0.10.0
libtpu: 0.0.40
codegen_flags: <defaults>
</compile_context>

<pallas_src>
import functools

import jax
import jax.numpy as jnp
from jax import lax
from jax.experimental import pallas as pl
from jax.experimental.pallas import tpu as pltpu

ALPHA = 0.5
GAMMA = 2
IGNORE_INDEX = 255
LANE = 128
SUBLANE = 8
_PACK = 32           # sublane multiple legal for every logits/labels dtype
_MAX_UNROLL_C = 16   # fully unroll the class loop up to this many classes


def _focal_partial_kernel(logits_ref, labels_ref, out_ref, *, ignore_index,
                          rows_total):
    """One grid step: partial CE sum + valid count for a (TR, 128)-pixel tile.

    logits_ref : (1, C, TR, 128) native dtype, pixels lane-dense
    labels_ref : (1, TR, 128)    integer dtype
    out_ref    : (1, 1, 16, 128) f32: sublanes 0:8 = CE sum, 8:16 = valid count
    """
    _, C, TR, _ = logits_ref.shape
    lab = labels_ref[0].astype(jnp.int32)                      # (TR, 128)

    # -- pass 1: running max over classes (streamed: no (C,TR,128) f32 temp) --
    m = logits_ref[0, 0].astype(jnp.float32)
    if C <= _MAX_UNROLL_C:
        for c in range(1, C):
            m = jnp.maximum(m, logits_ref[0, c].astype(jnp.float32))
    else:
        m = lax.fori_loop(
            1, C,
            lambda c, m: jnp.maximum(m, logits_ref[0, c].astype(jnp.float32)),
            m, unroll=8)

    # -- pass 2: sum-exp + target-logit pick (select into the accumulator) ----
    s = jnp.zeros((TR, LANE), jnp.float32)
    picked = jnp.zeros((TR, LANE), jnp.float32)
    if C <= _MAX_UNROLL_C:
        for c in range(C):
            x_c = logits_ref[0, c].astype(jnp.float32)
            s = s + jnp.exp(x_c - m)
            picked = jnp.where(lab == c, x_c, picked)
    else:
        def body(c, carry):
            s, picked = carry
            x_c = logits_ref[0, c].astype(jnp.float32)
            return s + jnp.exp(x_c - m), jnp.where(lab == c, x_c, picked)
        s, picked = lax.fori_loop(0, C, body, (s, picked), unroll=8)

    lse = m + jnp.log(s)                                       # (TR, 128)

    # NOTE: if num_classes > ignore_index, class id == ignore_index is dropped
    # (matches this nn.CrossEntropyLoss(ignore_index=...) configuration).
    valid = lab != ignore_index
    if rows_total % TR != 0:
        # Ragged last row-tile: the block overruns the array, so the overrun
        # region holds garbage logits/labels -- mask those rows explicitly.
        local_row = lax.broadcasted_iota(jnp.int32, (TR, LANE), 0)
        valid = valid & (pl.program_id(1) * TR + local_row < rows_total)

    per_pixel = jnp.where(valid, lse - picked, 0.0)            # masked CE
    valid_f = valid.astype(jnp.float32)

    # -- partial reduce (TR,128) -> (8,128); both halves in ONE output block --
    if TR % SUBLANE == 0:
        out_ref[0, 0, :SUBLANE, :] = (
            per_pixel.reshape(TR // SUBLANE, SUBLANE, LANE).sum(axis=0))
        out_ref[0, 0, SUBLANE:, :] = (
            valid_f.reshape(TR // SUBLANE, SUBLANE, LANE).sum(axis=0))
    else:
        # Tiny tiles (TR < 8): a single cross-sublane reduce is fine.
        out_ref[...] = jnp.zeros_like(out_ref)
        out_ref[0, 0, 0:1, :] = per_pixel.sum(axis=0, keepdims=True)
        out_ref[0, 0, SUBLANE:SUBLANE + 1, :] = valid_f.sum(axis=0, keepdims=True)


def focal_loss_2d(preds, labels, *, alpha=ALPHA, gamma=GAMMA,
                  ignore_index=IGNORE_INDEX, target_block_bytes=4 << 20):
    """preds: (N, C, H, W) float (any dtype); labels: (N, H, W) int.

    Returns scalar f32 focal loss. (NaN if every pixel is ignored, matching
    the reference / PyTorch behaviour.)  Pass uint8 labels to cut label HBM
    traffic; they are streamed in their given dtype and upcast in-kernel.
    """
    N, C, H, W = preds.shape
    P = H * W
    rows = pl.cdiv(P, LANE)                        # rows of 128 pixels

    logits = preds.reshape(N, C, P)                # free reshape, native dtype
    lab = labels.reshape(N, P)
    if not jnp.issubdtype(lab.dtype, jnp.integer):
        lab = lab.astype(jnp.int32)

    if P % LANE != 0:
        # Rare case (H*W not a multiple of 128): pad by < 128 pixels so the
        # free (rows, 128) reshape exists.  This is the only path that copies
        # the logits; padded pixels get ignore_index so they contribute 0.
        pad = rows * LANE - P
        logits = jnp.pad(logits, ((0, 0), (0, 0), (0, pad)))
        lab = jnp.pad(lab, ((0, 0), (0, pad)), constant_values=ignore_index)
    logits = logits.reshape(N, C, rows, LANE)
    lab = lab.reshape(N, rows, LANE)

    # ---- row-tile size: big lane-dense blocks, 32-sublane aligned ----------
    itemsize = jnp.dtype(preds.dtype).itemsize
    tr = max(_PACK, (target_block_bytes // (C * LANE * itemsize)) // _PACK * _PACK)

    # Keep at least ~4 grid tiles alive so both v7x TensorCores get work.
    if N * pl.cdiv(rows, tr) < 4 and rows > _PACK:
        needed_row_tiles = pl.cdiv(4, N)
        tr = min(tr, max(_PACK, (pl.cdiv(rows, needed_row_tiles) // _PACK) * _PACK))

    if tr >= rows:
        tr = rows                                   # full extent: always legal
    n_row_tiles = pl.cdiv(rows, tr)                 # ragged last tile masked in-kernel

    # ---- explicit VMEM limit with headroom under the chip's physical VMEM ---
    try:
        vmem_cap = int(pltpu.get_tpu_info().vmem_capacity_bytes)
    except Exception:
        vmem_cap = 64 << 20
    vmem_limit = int(min(vmem_cap * 3 // 4, 64 << 20))

    kernel = functools.partial(_focal_partial_kernel,
                               ignore_index=ignore_index, rows_total=rows)

    parts = pl.pallas_call(
        kernel,
        out_shape=jax.ShapeDtypeStruct((N, n_row_tiles, 2 * SUBLANE, LANE),
                                       jnp.float32),
        grid_spec=pltpu.PrefetchScalarGridSpec(
            num_scalar_prefetch=0,
            grid=(N, n_row_tiles),
            in_specs=[
                # (1, C, tr, 128): NCHW-compatible block, pixels lane-dense.
                pl.BlockSpec((1, C, tr, LANE), lambda n, r: (n, 0, r, 0)),
                pl.BlockSpec((1, tr, LANE), lambda n, r: (n, r, 0)),
            ],
            out_specs=pl.BlockSpec((1, 1, 2 * SUBLANE, LANE),
                                   lambda n, r: (n, r, 0, 0)),
        ),
        compiler_params=pltpu.CompilerParams(
            dimension_semantics=("parallel", "parallel"),
            vmem_limit_bytes=vmem_limit),
    )(logits, lab)

    # Tiny epilogue: reduce the per-tile partials and apply the focal transform.
    ce = jnp.sum(parts[:, :, :SUBLANE, :]) / jnp.sum(parts[:, :, SUBLANE:, :])
    logpt = -ce
    pt = jnp.exp(logpt)
    return -((1.0 - pt) ** gamma) * alpha * logpt


def _reference(preds, labels, *, alpha=ALPHA, gamma=GAMMA,
               ignore_index=IGNORE_INDEX):
    N, C, H, W = preds.shape
    logits = jnp.transpose(preds, (0, 2, 3, 1)).reshape(-1, C).astype(jnp.float32)
    lab = labels.reshape(-1).astype(jnp.int32)
    lse = jax.scipy.special.logsumexp(logits, axis=-1)
    picked = jnp.take_along_axis(
        logits, jnp.clip(lab, 0, C - 1)[:, None], axis=-1)[:, 0]
    valid = (lab != ignore_index).astype(jnp.float32)
    ce = jnp.sum((lse - picked) * valid) / jnp.sum(valid)
    logpt = -ce
    pt = jnp.exp(logpt)
    return -((1.0 - pt) ** gamma) * alpha * logpt


def _run_case(key, shape, dtype, label_dtype=jnp.int32, frac_ignore=0.1):
    N, C, H, W = shape
    k1, k2, k3 = jax.random.split(key, 3)
    preds = jax.random.normal(k1, shape, dtype=jnp.float32).astype(dtype)
    labels = jax.random.randint(k2, (N, H, W), 0, C, dtype=jnp.int32)
    ignore_mask = jax.random.uniform(k3, (N, H, W)) < frac_ignore
    labels = jnp.where(ignore_mask, IGNORE_INDEX, labels).astype(label_dtype)

    loss = jax.block_until_ready(focal_loss_2d(preds, labels))
    ref = _reference(preds, labels)
    assert jnp.allclose(loss, ref, rtol=1e-4, atol=1e-5), (shape, dtype, loss, ref)
    return loss


if __name__ == "__main__":
    key = jax.random.PRNGKey(0)
    cases = [
        # shape (N, C, H, W), logits dtype, labels dtype
        ((2, 4, 16, 16), jnp.float32, jnp.int32),    # tiny: TR < 8 fallback reduce
        ((2, 5, 32, 32), jnp.float32, jnp.int32),    # TR == rows, unrolled classes
        ((1, 4, 40, 24), jnp.float32, jnp.int32),    # H*W % 128 != 0 (minimal pad)
        ((1, 4, 128, 34), jnp.float32, jnp.uint8),   # ragged last row-tile + u8 labels
        ((1, 20, 32, 32), jnp.float32, jnp.int32),   # C > 16: fori_loop class stream
        ((2, 4, 64, 64), jnp.bfloat16, jnp.int32),   # bf16 logits, upcast in-kernel
    ]
    for shape, dt, ldt in cases:
        key, sub = jax.random.split(key)
        _run_case(sub, shape, dt, ldt)
    print("KERNEL_OK")
</pallas_src>

<mosaic_0001>
module attributes {stable_mosaic.version = 11 : i64} {
  func.func @_focal_partial_kernel(%arg0: i32, %arg1: i32, %arg2: memref<1x4x2x128xf32, #tpu.memory_space<vmem>>, %arg3: memref<1x2x128xi32, #tpu.memory_space<vmem>>, %arg4: memref<1x1x16x128xf32, #tpu.memory_space<vmem>>) attributes {dimension_semantics = [#tpu.dimension_semantics<parallel>, #tpu.dimension_semantics<parallel>], iteration_bounds = array<i64: 2, 1>, scalar_prefetch = 0 : i64, scratch_operands = 0 : i64, tpu.core_type = #tpu.core_type<tc>, window_params = [{transform_indices = @transform_0, window_bounds = array<i64: 1, 4, 2, 128>}, {transform_indices = @transform_1, window_bounds = array<i64: 1, 2, 128>}, {transform_indices = @transform_2, window_bounds = array<i64: 1, 1, 16, 128>}]} {
    %c0 = arith.constant 0 : index
    %c0_0 = arith.constant 0 : index
    %c0_1 = arith.constant 0 : index
    %0 = vector.load %arg3[%c0, %c0_0, %c0_1] : memref<1x2x128xi32, #tpu.memory_space<vmem>>, vector<1x2x128xi32>
    %1 = vector.shape_cast %0 : vector<1x2x128xi32> to vector<2x128xi32>
    %c0_2 = arith.constant 0 : index
    %c0_3 = arith.constant 0 : index
    %c0_4 = arith.constant 0 : index
    %c0_5 = arith.constant 0 : index
    %2 = vector.load %arg2[%c0_2, %c0_3, %c0_4, %c0_5] : memref<1x4x2x128xf32, #tpu.memory_space<vmem>>, vector<1x1x2x128xf32>
    %3 = vector.shape_cast %2 : vector<1x1x2x128xf32> to vector<2x128xf32>
    %c0_6 = arith.constant 0 : index
    %c1 = arith.constant 1 : index
    %c0_7 = arith.constant 0 : index
    %c0_8 = arith.constant 0 : index
    %4 = vector.load %arg2[%c0_6, %c1, %c0_7, %c0_8] : memref<1x4x2x128xf32, #tpu.memory_space<vmem>>, vector<1x1x2x128xf32>
    %5 = vector.shape_cast %4 : vector<1x1x2x128xf32> to vector<2x128xf32>
    %6 = arith.maximumf %3, %5 : vector<2x128xf32>
    %c0_9 = arith.constant 0 : index
    %c2 = arith.constant 2 : index
    %c0_10 = arith.constant 0 : index
    %c0_11 = arith.constant 0 : index
    %7 = vector.load %arg2[%c0_9, %c2, %c0_10, %c0_11] : memref<1x4x2x128xf32, #tpu.memory_space<vmem>>, vector<1x1x2x128xf32>
    %8 = vector.shape_cast %7 : vector<1x1x2x128xf32> to vector<2x128xf32>
    %9 = arith.maximumf %6, %8 : vector<2x128xf32>
    %c0_12 = arith.constant 0 : index
    %c3 = arith.constant 3 : index
    %c0_13 = arith.constant 0 : index
    %c0_14 = arith.constant 0 : index
    %10 = vector.load %arg2[%c0_12, %c3, %c0_13, %c0_14] : memref<1x4x2x128xf32, #tpu.memory_space<vmem>>, vector<1x1x2x128xf32>
    %11 = vector.shape_cast %10 : vector<1x1x2x128xf32> to vector<2x128xf32>
    %12 = arith.maximumf %9, %11 : vector<2x128xf32>
    %cst = arith.constant 0.000000e+00 : f32
    %13 = vector.broadcast %cst : f32 to vector<2x128xf32>
    %cst_15 = arith.constant 0.000000e+00 : f32
    %14 = vector.broadcast %cst_15 : f32 to vector<2x128xf32>
    %c0_16 = arith.constant 0 : index
    %c0_17 = arith.constant 0 : index
    %c0_18 = arith.constant 0 : index
    %c0_19 = arith.constant 0 : index
    %15 = vector.load %arg2[%c0_16, %c0_17, %c0_18, %c0_19] : memref<1x4x2x128xf32, #tpu.memory_space<vmem>>, vector<1x1x2x128xf32>
    %16 = vector.shape_cast %15 : vector<1x1x2x128xf32> to vector<2x128xf32>
    %17 = arith.subf %16, %12 : vector<2x128xf32>
    %18 = math.exp %17 : vector<2x128xf32>
    %19 = arith.addf %13, %18 : vector<2x128xf32>
    %c0_i32 = arith.constant 0 : i32
    %20 = vector.broadcast %c0_i32 : i32 to vector<2x128xi32>
    %21 = arith.cmpi eq, %1, %20 : vector<2x128xi32>
    %22 = arith.select %21, %16, %14 : vector<2x128xi1>, vector<2x128xf32>
    %c0_20 = arith.constant 0 : index
    %c1_21 = arith.constant 1 : index
    %c0_22 = arith.constant 0 : index
    %c0_23 = arith.constant 0 : index
    %23 = vector.load %arg2[%c0_20, %c1_21, %c0_22, %c0_23] : memref<1x4x2x128xf32, #tpu.memory_space<vmem>>, vector<1x1x2x128xf32>
    %24 = vector.shape_cast %23 : vector<1x1x2x128xf32> to vector<2x128xf32>
    %25 = arith.subf %24, %12 : vector<2x128xf32>
    %26 = math.exp %25 : vector<2x128xf32>
    %27 = arith.addf %19, %26 : vector<2x128xf32>
    %c1_i32 = arith.constant 1 : i32
    %28 = vector.broadcast %c1_i32 : i32 to vector<2x128xi32>
    %29 = arith.cmpi eq, %1, %28 : vector<2x128xi32>
    %30 = arith.select %29, %24, %22 : vector<2x128xi1>, vector<2x128xf32>
    %c0_24 = arith.constant 0 : index
    %c2_25 = arith.constant 2 : index
    %c0_26 = arith.constant 0 : index
    %c0_27 = arith.constant 0 : index
    %31 = vector.load %arg2[%c0_24, %c2_25, %c0_26, %c0_27] : memref<1x4x2x128xf32, #tpu.memory_space<vmem>>, vector<1x1x2x128xf32>
    %32 = vector.shape_cast %31 : vector<1x1x2x128xf32> to vector<2x128xf32>
    %33 = arith.subf %32, %12 : vector<2x128xf32>
    %34 = math.exp %33 : vector<2x128xf32>
    %35 = arith.addf %27, %34 : vector<2x128xf32>
    %c2_i32 = arith.constant 2 : i32
    %36 = vector.broadcast %c2_i32 : i32 to vector<2x128xi32>
    %37 = arith.cmpi eq, %1, %36 : vector<2x128xi32>
    %38 = arith.select %37, %32, %30 : vector<2x128xi1>, vector<2x128xf32>
    %c0_28 = arith.constant 0 : index
    %c3_29 = arith.constant 3 : index
    %c0_30 = arith.constant 0 : index
    %c0_31 = arith.constant 0 : index
    %39 = vector.load %arg2[%c0_28, %c3_29, %c0_30, %c0_31] : memref<1x4x2x128xf32, #tpu.memory_space<vmem>>, vector<1x1x2x128xf32>
    %40 = vector.shape_cast %39 : vector<1x1x2x128xf32> to vector<2x128xf32>
    %41 = arith.subf %40, %12 : vector<2x128xf32>
    %42 = math.exp %41 : vector<2x128xf32>
    %43 = arith.addf %35, %42 : vector<2x128xf32>
    %c3_i32 = arith.constant 3 : i32
    %44 = vector.broadcast %c3_i32 : i32 to vector<2x128xi32>
    %45 = arith.cmpi eq, %1, %44 : vector<2x128xi32>
    %46 = arith.select %45, %40, %38 : vector<2x128xi1>, vector<2x128xf32>
    %47 = math.log %43 : vector<2x128xf32>
    %48 = arith.addf %12, %47 : vector<2x128xf32>
    %c255_i32 = arith.constant 255 : i32
    %49 = vector.broadcast %c255_i32 : i32 to vector<2x128xi32>
    %50 = arith.cmpi ne, %1, %49 : vector<2x128xi32>
    %51 = arith.subf %48, %46 : vector<2x128xf32>
    %cst_32 = arith.constant 0.000000e+00 : f32
    %52 = vector.broadcast %cst_32 : f32 to vector<2x128xf32>
    %53 = arith.select %50, %51, %52 : vector<2x128xi1>, vector<2x128xf32>
    %54 = arith.extui %50 : vector<2x128xi1> to vector<2x128xi32>
    %55 = arith.sitofp %54 : vector<2x128xi32> to vector<2x128xf32>
    %cst_33 = arith.constant 0.000000e+00 : f32
    %56 = vector.broadcast %cst_33 : f32 to vector<1x1x16x128xf32>
    %c0_34 = arith.constant 0 : index
    %c0_35 = arith.constant 0 : index
    %c0_36 = arith.constant 0 : index
    %c0_37 = arith.constant 0 : index
    %57 = vector.load %arg4[%c0_34, %c0_35, %c0_36, %c0_37] : memref<1x1x16x128xf32, #tpu.memory_space<vmem>>, vector<1x1x16x128xf32>
    tpu.vector_store %arg4[%c0_34, %c0_35, %c0_36, %c0_37], %56 {strides = array<i32>} : memref<1x1x16x128xf32, #tpu.memory_space<vmem>>, vector<1x1x16x128xf32>,
    %cst_38 = arith.constant dense<0.000000e+00> : vector<128xf32>
    %58 = vector.multi_reduction <add>, %53, %cst_38 [0] : vector<2x128xf32> to vector<128xf32>
    %59 = vector.shape_cast %58 : vector<128xf32> to vector<1x128xf32>
    %c0_39 = arith.constant 0 : index
    %c0_40 = arith.constant 0 : index
    %c0_41 = arith.constant 0 : index
    %c0_42 = arith.constant 0 : index
    %60 = vector.load %arg4[%c0_39, %c0_40, %c0_41, %c0_42] : memref<1x1x16x128xf32, #tpu.memory_space<vmem>>, vector<1x1x1x128xf32>
    %61 = vector.shape_cast %60 : vector<1x1x1x128xf32> to vector<1x128xf32>
    %62 = vector.shape_cast %59 : vector<1x128xf32> to vector<1x1x1x128xf32>
    tpu.vector_store %arg4[%c0_39, %c0_40, %c0_41, %c0_42], %62 {strides = array<i32>} : memref<1x1x16x128xf32, #tpu.memory_space<vmem>>, vector<1x1x1x128xf32>,
    %cst_43 = arith.constant dense<0.000000e+00> : vector<128xf32>
    %63 = vector.multi_reduction <add>, %55, %cst_43 [0] : vector<2x128xf32> to vector<128xf32>
    %64 = vector.shape_cast %63 : vector<128xf32> to vector<1x128xf32>
    %c0_44 = arith.constant 0 : index
    %c0_45 = arith.constant 0 : index
    %c8 = arith.constant 8 : index
    %c0_46 = arith.constant 0 : index
    %65 = vector.load %arg4[%c0_44, %c0_45, %c8, %c0_46] : memref<1x1x16x128xf32, #tpu.memory_space<vmem>>, vector<1x1x1x128xf32>
    %66 = vector.shape_cast %65 : vector<1x1x1x128xf32> to vector<1x128xf32>
    %67 = vector.shape_cast %64 : vector<1x128xf32> to vector<1x1x1x128xf32>
    tpu.vector_store %arg4[%c0_44, %c0_45, %c8, %c0_46], %67 {strides = array<i32>} : memref<1x1x16x128xf32, #tpu.memory_space<vmem>>, vector<1x1x1x128xf32>,
    return
  }
  func.func @transform_0(%arg0: i32, %arg1: i32) -> (i32, i32, i32, i32) {
    %c0_i32 = arith.constant 0 : i32
    %c0_i32_0 = arith.constant 0 : i32
    %c0_i32_1 = arith.constant 0 : i32
    return %arg0, %c0_i32, %arg1, %c0_i32_0 : i32, i32, i32, i32
  }
  func.func @transform_1(%arg0: i32, %arg1: i32) -> (i32, i32, i32) {
    %c0_i32 = arith.constant 0 : i32
    %c0_i32_0 = arith.constant 0 : i32
    return %arg0, %arg1, %c0_i32 : i32, i32, i32
  }
  func.func @transform_2(%arg0: i32, %arg1: i32) -> (i32, i32, i32, i32) {
    %c0_i32 = arith.constant 0 : i32
    %c0_i32_0 = arith.constant 0 : i32
    %c0_i32_1 = arith.constant 0 : i32
    return %arg0, %arg1, %c0_i32, %c0_i32_0 : i32, i32, i32, i32
  }
}

</mosaic_0001>

<bundles_post_ra>
// kernel: tpu_custom_call.1
= control target key start
LH: loop header
LB: loop body
LE: loop exit
PB: predicated region body
PF: predicated region fallthrough
CT: control target
= control target key end

     0   :  { %7 = vsyncpa [#allocation3], 0  ;;  %s866_s0 = inlined_call_operand.hbm [shape: f32[2,4,2,128], index: 0, kind: input, shape index: {}]   ;;  %s867_s1 = inlined_call_operand.hbm [shape: s32[2,2,128], index: 1, kind: input, shape index: {}]   ;;  %s868_s2 = inlined_call_operand.hbm [shape: f32[2,1,16,128], index: 2, kind: output, shape index: {}]  }
   0x1   :  { %9 = vsyncpa [#allocation3 + $0x1], 0 }
   0x2   :  { %10 = vsyncpa [#allocation6], 0 }
   0x3   :  { %12 = vsyncpa [#allocation6 + $0x1], 0 }
   0x4   :  { %13 = vsyncpa [#allocation4], 0 }
   0x5   :  { %15 = vsyncpa [#allocation4 + $0x1], 0  ;;  %s678_s9 = smov 0   ;;  %s680_s10 = smov 0  }
   0x6   :  { %s682_s11 = smov 0   ;;  %s684_s12 = smov 0  }
   0x7   :  { %s686_s13 = smov 0   ;;  %s688_s14 = smov 0  }
   0x8 LB: > { %s407_s15 = sadd.s32 4294967295, %s653_s14   ;;  %s408_s16 = sadd.s32 4294967294, %s653_s14   ;;  %s653_s14 = sphi %s688_s14, %s21_s14   ;;  %s649_s13 = sphi %s686_s13, %s879_s13   ;;  %s645_s12 = sphi %s684_s12, %s878_s12   ;;  %s641_s11 = sphi %s682_s11, %s877_s11   ;;  %s637_s10 = sphi %s680_s10, %s876_s10   ;;  %s633_s9 = sphi %s678_s9, %s875_s9  }
   0x9   : > { %s33_s17 = sadd.s32 1, %s649_s13  ;;  %s42_s18 = sadd.s32 1, %s641_s11 }
   0xa   : > { %p35_p0 = scmp.ge.s32.totalorder %s33_s17, 2  ;;  %p49_p1 = scmp.ne.s32.totalorder %s641_s11, %s637_s10 }
   0xb   : > { %p50_p2 = scmp.eq.s32.totalorder %s653_s14, 0  ;;  %p55_p3 = scmp.ne.s32.totalorder %s637_s10, %s633_s9 }
   0xc   : > { %s881_s17 = smov (%p35_p0, %s33_s17), 0  ;;  %p56_p5 = scmp.eq.s32.totalorder %s407_s15, 0 }
   0xd   : > { %p719_p4 = por %p50_p2, %p49_p1  ;;  %s37_s20 = ssub.s32 %s649_s13, %s881_s17 }
   0xe   : > { %p109_p6 = scmp.eq.s32.totalorder %s407_s15, 1  ;;  %p40_p7 = scmp.eq.s32.totalorder %s37_s20, 0 }
   0xf   : > { %p725_p8 = por %p56_p5, %p55_p3  ;;  %p115_p10 = scmp.eq.s32.totalorder %s408_s16, 1 }
  0x10   : > { %p729_p9 = por %p109_p6, %p49_p1  ;;  %p410_p12 = scmp.ge.s32.totalorder %s653_s14, 2 }
  0x11   : > { %s734_s23 = scalar_select %p40_p7, %s641_s11, %s42_s18  }
  0x12   : > { %p736_p11 = por %p115_p10, %p55_p3  ;;  %p448_p13 = scmp.lt.s32.totalorder %s653_s14, 2 }
  0x13   : > { %s743_s25 = sand.u32 1, %s641_s11   ;;  %s429_s27 = sshll.u32 %s649_s13, 7 }
  0x14   : > { %s411_s26 = sshll.u32 %s743_s25, 3  ;;  %s146_s30 = scalar_lea.hbm %s866_s0, %s429_s27 }
  0x15   : > { %s139_s3 = scalar_lea.vmem [#allocation2], %s411_s26  ;;  %p752_p0 = pnand %p448_p13, %p719_p4 }
  0x16   : > { %s147_s4 = sshll.u32 %s139_s3, 4  ;;  %p416_p1 = scmp.ge.s32.totalorder %s653_s14, 1  ;;  %s148_s4 = int_to_ptr.vmem [resolvable:$true] %s147_s4 }
  0x17   : > { %s136_s6 = scalar_lea.sflag [#allocation3], %s743_s25  ;;  %p515_p2 = pneg %p752_p0 }
  0x18   : > { %s526_s7 = scalar_lea.vmem %s148_s4, 128  ;;  %s655_s8 = smov [#allocation2]  }
  0x19   : > { %p527_p3 = scmp.ne.s32.totalorder %s148_s4, %s526_s7  ;;  %s531_s15 = sshll.u32 %s655_s8, 4  ;;  %s532_s15 = int_to_ptr.vmem [resolvable:$false] %s531_s15 }
  0x1a   : > { %s533_s16 = scalar_lea.vmem %s532_s15, 256  ;;  %p534_p4 = scmp.lt.s32.totalorder %s148_s4, %s532_s15 }
  0x1b   : > { %p529_p5 = pnand %p527_p3, %p515_p2  ;;  %p535_p7 = scmp.lt.s32.totalorder %s533_s16, %s526_s7 }
  0x1d   : > { %p530_p6 = pneg %p529_p5  ;;  %p536_p10 = por %p535_p7, %p534_p4 }
  0x1f   : > { %p537_p13 = pnand %p536_p10, %p530_p6 }
  0x21   : > { %540 = shalt.err (!%p537_p13)
}
  0x22   : > { %s656_s18 = smov 32   ;;  %s657_s19 = smov 2  }
  0x23   : > { %440 = dma.hbm_to_vmem [thread:$0]  (!%p752_p0), %s146_s30, 128, %s148_s4, %s136_s6, %s656_s18, %s656_s18, %s657_s19  }
  0x24   : > { %p174_p3 = scmp.lt.s32.totalorder %s653_s14, 3  ;;  %s414_s20 = sshll.u32 %s743_s25, 1 }
  0x25   : > { %s415_s26 = sshll.u32 %s649_s13, 5  ;;  %s161_s7 = scalar_lea.vmem [#allocation5], %s414_s20 }
  0x26   : > { %p770_p5 = pnand %p416_p1, %p174_p3  ;;  %s167_s3 = scalar_lea.hbm %s867_s1, %s415_s26 }
  0x27   : > { %s169_s8 = sshll.u32 %s161_s7, 4  ;;  %s158_s15 = scalar_lea.sflag [#allocation6], %s743_s25  ;;  %s170_s8 = int_to_ptr.vmem [resolvable:$true] %s169_s8 }
  0x28   : > { %s554_s16 = scalar_lea.vmem %s170_s8, 32  ;;  %s658_s30 = smov [#allocation5]  }
  0x29   : > { %p555_p6 = scmp.ne.s32.totalorder %s170_s8, %s554_s16  ;;  %s559_s4 = sshll.u32 %s658_s30, 4  ;;  %s560_s4 = int_to_ptr.vmem [resolvable:$false] %s559_s4 }
  0x2a   : > { %s561_s6 = scalar_lea.vmem %s560_s4, 64  ;;  %p562_p1 = scmp.lt.s32.totalorder %s170_s8, %s560_s4 }
  0x2b   : > { %p557_p4 = pnand %p555_p6, %p515_p2  ;;  %p563_p10 = scmp.lt.s32.totalorder %s561_s6, %s554_s16 }
  0x2d   : > { %p558_p7 = pneg %p557_p4  ;;  %p564_p13 = por %p563_p10, %p562_p1 }
  0x2f   : > { %p565_p3 = pnand %p564_p13, %p558_p7 }
  0x31   : > { %568 = shalt.err (!%p565_p3)
}
  0x32   : > { %443 = dma.hbm_to_vmem [thread:$0]  (!%p752_p0), %s167_s3, 32, %s170_s8, %s158_s15  }
  0x33   : > { %178 = sbr.rel (%p770_p5) target bundleno = 141 (0x8d), region = 28  ;;  %s786_s25 = sand.u32 (!%p770_p5), 1, %s637_s10  }
  0x34   : > { %s417_s18 = sshll.u32 (!%p770_p5), %s786_s25, 3  ;;  %s181_s19 = scalar_lea.sflag (!%p770_p5), [#allocation3], %s786_s25 }
  0x35   : > { %s184_s20 = scalar_lea.vmem (!%p770_p5), [#allocation2], %s417_s18 }
  0x38   : > { %620 = dma.done.wait (%p725_p8), %s181_s19, 128  }
  0x39   : > { %622 = vsyncadd (%p725_p8), %s181_s19, 4294967168  ;;  %s418_s5 = sshll.u32 %s786_s25, 1  ;;  %s190_s26 = scalar_lea.sflag [#allocation6], %s786_s25 }
  0x3a   : > { %s193_s27 = scalar_lea.vmem [#allocation5], %s418_s5 }
  0x3b   : > { %624 = dma.done.wait (%p725_p8), %s190_s26, 32  }
  0x3c   : > { %626 = vsyncadd (%p725_p8), %s190_s26, 4294967264  ;;  %s419_s28 = sshll.u32 %s786_s25, 4  ;;  %v659_v0 = vmov 0.0   ;;  %v220_v1 = vld [vmem:[%s184_s20] sm:$0x3]  ;;  %vm264_vm0 = vcmask 1041408  }
  0x3d   : > { %s801_s29 = scalar_lea.vmem [#allocation7], %s419_s28  ;;  %v420_v2 = vld [vmem:[%s184_s20 + $0x2] sm:$0x3]  ;;  %v219_v3 = vld [vmem:[%s193_s27] sm:$0x3]  ;;  %s430_s3 = sshll.u32 %s645_s12, 8 }
  0x3e   : > { %262 = vst [vmem:[%s801_s29] sm:$0xff] %v659_v0  ;;  %263 = vst [vmem:[%s801_s29 + $0x8] sm:$0xff] %v659_v0  ;;  %v223_v4 = vmax.f32 %v220_v1, %v420_v2  ;;  %v421_v5 = vld [vmem:[%s184_s20 + $0x4] sm:$0x3]  ;;  %v422_v6 = vld [vmem:[%s184_s20 + $0x6] sm:$0x3]  ;;  %vm257_vm1 = vcmp.ne.s32.totalorder %v219_v3, 255  ;;  %s817_s15 = scalar_lea.hbm %s868_s2, %s430_s3 }
  0x3f   : > { %v423_v8 = vsel %vm257_vm1, 1.0, %v659_v0  ;;  %vm234_vm2 = vcmp.eq.s32.totalorder %v219_v3, 0  ;;  %vm240_vm3 = vcmp.eq.s32.totalorder %v219_v3, 1  ;;  %vm246_vm4 = vcmp.eq.s32.totalorder %v219_v3, 2  ;;  %s297_s21 = sshll.u32 %s801_s29, 4  ;;  %s282_s16 = scalar_lea.sflag [#allocation4], %s786_s25  ;;  %s812_s21 = int_to_ptr.vmem [resolvable:$true] %s297_s21 }
  0x40   : > { %v226_v7 = vmax.f32 %v223_v4, %v421_v5  ;;  %v273_v9 = vsel %vm264_vm0, %v423_v8, 0.0  ;;  %v235_v32 = vsel %vm234_vm2, %v220_v1, 0.0  ;;  %vm252_vm5 = vcmp.eq.s32.totalorder %v219_v3, 3  ;;  %s569_s30 = scalar_lea.vmem %s812_s21, 256  ;;  %s660_s12 = smov [#allocation7]  }
  0x41   : > { %v274_v11 = vrot.slane %v273_v9, 4  ;;  %v241_v33 = vsel %vm240_vm3, %v420_v2, %v235_v32  ;;  %p570_p8 = scmp.ne.s32.totalorder %s812_s21, %s569_s30  ;;  %s573_s4 = sshll.u32 %s660_s12, 4  ;;  %s574_s4 = int_to_ptr.vmem [resolvable:$false] %s573_s4 }
  0x42   : > { %v229_v10 = vmax.f32 %v226_v7, %v422_v6  ;;  %v247_v34 = vsel %vm246_vm4, %v421_v5, %v241_v33  ;;  %s575_s6 = scalar_lea.vmem %s574_s4, 512  ;;  %p576_p5 = scmp.lt.s32.totalorder %s812_s21, %s574_s4 }
  0x43   : > { %v275_v16 = vadd.f32 %v274_v11, %v273_v9  ;;  %v253_v37 = vsel %vm252_vm5, %v422_v6, %v247_v34  ;;  %p571_p0 = pnand %p570_p8, %p729_p9  ;;  %p577_p6 = scmp.lt.s32.totalorder %s575_s6, %s569_s30 }
  0x44   : > { %v230_v12 = vsub.f32 %v220_v1, %v229_v10  ;;  %v236_v13 = vsub.f32 %v420_v2, %v229_v10  ;;  %v242_v14 = vsub.f32 %v421_v5, %v229_v10  ;;  %v248_v15 = vsub.f32 %v422_v6, %v229_v10 }
  0x45   : > { %v276_v21 = vrot.slane %v275_v16, 2  ;;  %p572_p2 = pneg %p571_p0  ;;  %p578_p4 = por %p577_p6, %p576_p5 }
  0x46   : > { %v231_v17 = vmul.f32 1.442695, %v230_v12  ;;  %v237_v18 = vmul.f32 1.442695, %v236_v13  ;;  %v243_v19 = vmul.f32 1.442695, %v242_v14 }
  0x47   : > { %v249_v20 = vmul.f32 1.442695, %v248_v15  ;;  %v277_v22 = vadd.f32 %v276_v21, %v275_v16  ;;  %p579_p7 = pnand %p578_p4, %p572_p2 }
  0x48   : > { %503 = vpow2.f32 %v231_v17 }
  0x49   : > { %505 = vpow2.f32 %v237_v18  ;;  %v278_v23 = vrot.slane %v277_v22, 1 }
  0x4a   : > { %507 = vpow2.f32 %v243_v19 }
  0x4b   : > { %509 = vpow2.f32 %v249_v20  ;;  %v279_v24 = vadd.f32 %v278_v23, %v277_v22 }
  0x4d   : > { %280 = vst [vmem:[%s801_s29 + $0x8] sm:$0x1] %v279_v24 }
  0x55   : > { %v504_v25 = vpop.eup %503 }
  0x56   : > { %v506_v26 = vpop.eup %505 }
  0x57   : > { %v508_v27 = vpop.eup %507  ;;  %v239_v28 = vadd.f32 %v506_v26, %v504_v25 }
  0x58   : > { %v510_v29 = vpop.eup %509 }
  0x59   : > { %v245_v30 = vadd.f32 %v508_v27, %v239_v28 }
  0x5b   : > { %v251_v31 = vadd.f32 %v510_v29, %v245_v30 }
  0x5d   : > { %511 = vlog2.f32 %v251_v31 }
  0x6a   : > { %v512_v35 = vpop.eup %511 }
  0x6b   : > { %v255_v36 = vmul.f32 0.6931472, %v512_v35 }
  0x6d   : > { %v256_v38 = vadd.f32 %v255_v36, %v229_v10 }
  0x6f   : > { %v258_v39 = vsub.f32 %v256_v38, %v253_v37 }
  0x71   : > { %v259_v40 = vsel %vm257_vm1, %v258_v39, 0.0 }
  0x72   : > { %v265_v41 = vsel %vm264_vm0, %v259_v40, 0.0 }
  0x73   : > { %v266_v42 = vrot.slane %v265_v41, 4 }
  0x75   : > { %v267_v43 = vadd.f32 %v266_v42, %v265_v41 }
  0x77   : > { %v268_v44 = vrot.slane %v267_v43, 2 }
  0x79   : > { %v269_v45 = vadd.f32 %v268_v44, %v267_v43 }
  0x7b   : > { %v270_v46 = vrot.slane %v269_v45, 1 }
  0x7d   : > { %v271_v47 = vadd.f32 %v270_v46, %v269_v45 }
  0x7f   : > { %272 = vst [vmem:[%s801_s29] sm:$0x1] %v271_v47 }
  0x80   : > { %582 = shalt.err (!%p579_p7)
}
  0x81   : > { %s583_s18 = scalar_lea.hbm %s817_s15, 256  ;;  %s587_s5 = scalar_lea.hbm %s868_s2, 512 }
  0x82   : > { %p584_p1 = scmp.ne.s32.totalorder %s817_s15, %s583_s18  ;;  %p588_p3 = scmp.lt.s32.totalorder %s817_s15, %s868_s2 }
  0x83   : > { %p589_p8 = scmp.lt.s32.totalorder %s587_s5, %s583_s18 }
  0x84   : > { %p585_p10 = pnand %p584_p1, %p729_p9 }
  0x85   : > { %p590_p0 = por %p589_p8, %p588_p3 }
  0x86   : > { %p586_p13 = pneg %p585_p10 }
  0x88   : > { %p591_p2 = pnand %p590_p0, %p586_p13 }
  0x8a   : > { %594 = shalt.err (!%p591_p2)
}
  0x8b   : > { %s661_s28 = smov 128   ;;  %s662_s29 = smov 8  }
  0x8c   : > { %435 = dma.vmem_to_hbm [thread:$0]  (%p729_p9), %s812_s21, 256, %s817_s15, %s282_s16, %s661_s28, %s661_s28, %s662_s29  }
  0x8d PF: > { %s312_s3 = sand.u32 1, %s633_s9   ;;  %p445_p5 = pnand %p410_p12, %p736_p11 }
  0x8e   : > { %s313_s7 = scalar_lea.sflag [#allocation4], %s312_s3 }
  0x8f   : > { %p446_p6 = pneg %p445_p5 }
  0x91   : > { %628 = dma.done.wait (%p446_p6), %s313_s7, 256  }
  0x92   : > { %630 = vsyncadd (%p446_p6), %s313_s7, 4294967040  ;;  %s21_s14 = sadd.s32 1, %s653_s14   ;;  %s875_s9 = smov %s637_s10 }
  0x93   : > { %p18_p4 = scmp.ge.s32.totalorder %s21_s14, 4   ;;  %s876_s10 = smov %s641_s11 }
  0x94   : > { %s877_s11 = smov %s734_s23  ;;  %s878_s12 = smov %s649_s13 }
  0x95   : > { %s879_s13 = smov %s881_s17  ;;  %20 = sbr.rel (!%p18_p4) target bundleno = 8 (0x8), region = 89 }
  0x9a   :  { %318 = vsyncpa [#allocation3], 1 }
  0x9b   :  { %320 = vsyncpa [#allocation3 + $0x1], 1 }
  0x9c   :  { %321 = vsyncpa [#allocation6], 1 }
  0x9d   :  { %323 = vsyncpa [#allocation6 + $0x1], 1 }
  0x9e   :  { %324 = vsyncpa [#allocation4], 1 }
  0x9f   :  { %326 = vsyncpa [#allocation4 + $0x1], 1 }

</bundles_post_ra>
